<compile_context>
chip_gen: v7x
topology: tpu7x:2x2x1
jax: 0.10.0
libtpu: 0.0.40
codegen_flags: <defaults>
</compile_context>

<pallas_src>
import jax
import jax.numpy as jnp
from jax import lax
from jax.experimental import pallas as pl
from jax.experimental.pallas import tpu as pltpu


def _round_up(x, m):
    return ((x + m - 1) // m) * m


def ranknet_kernel(x1_ref, x2_ref, w1_ref, b1_ref, w2_ref, b2_ref,
                   w3_ref, out_ref):
    # x*_ref: (tb, F) row-major tiles.  Weights (PyTorch layout, resident in
    # VMEM across the whole grid): w1 (H1, F), b1 (H1, 1), w2 (H2, H1),
    # b2 (H2, 1), w3 (H2, 1).  Output block: (1, tb) lane-dense row.
    trans_rhs = (((1,), (1,)), ((), ()))   # contract F with F: W1 @ x^T

    def score_t(x):
        # h1^T = relu(W1 @ x^T + b1)            -> (H1, tb), batch on lanes
        h1t = lax.dot_general(w1_ref[...], x, trans_rhs,
                              preferred_element_type=jnp.float32)
        h1t = jnp.maximum(h1t + b1_ref[...], 0.0)
        # h2^T = relu(W2 @ h1^T + b2)           -> (H2, tb)
        h2t = jnp.dot(w2_ref[...], h1t, preferred_element_type=jnp.float32)
        return jnp.maximum(h2t + b2_ref[...], 0.0)

    # s1 - s2 = w3 . (h2_1 - h2_2)  (b3 cancels).  N=1 projection done as an
    # elementwise mul + sublane reduce -> already a lane-dense (1, tb) row.
    d = score_t(x1_ref[...]) - score_t(x2_ref[...])              # (H2, tb)
    diff = jnp.sum(d * w3_ref[...], axis=0, keepdims=True)       # (1, tb)

    # Numerically-stable sigmoid (exp on EUP; no inf intermediates).
    e = jnp.exp(-jnp.abs(diff))
    num = jnp.where(diff >= 0, 1.0, e)
    out_ref[...] = (num / (1.0 + e)).astype(out_ref.dtype)


def ranknet_forward(x1, x2, params, tile_b=2048):
    """x1, x2: (B, n_feature) float32. Returns sigmoid(s1 - s2): (B, 1)."""
    w1, b1, w2, b2, w3, b3 = params   # b3 unused: it cancels in s1 - s2
    del b3
    B, F = x1.shape
    H1 = w1.shape[0]
    H2 = w2.shape[0]
    w3c = w3.reshape(H2, 1)           # (1, H2) -> (H2, 1) column

    # Tile selection.  Multi-tile blocks must have lane dim (output) divisible
    # by 128 and sublane dim (inputs) divisible by 8; a single tile equal to
    # the full array dims is always legal.
    tile_b = max(128, (int(tile_b) // 128) * 128)
    if B > tile_b:
        tb = tile_b
    elif B >= 512:
        # Enough work to split: keep >= 2 tiles so v7x's 2 TCs both run.
        tb = _round_up(pl.cdiv(B, 2), 128)
    else:
        tb = B                         # single full-array tile
    num_tiles = pl.cdiv(B, tb)         # ragged last block handled by Pallas

    const = lambda shape: pl.BlockSpec(shape, lambda i: (0,) * len(shape))

    out = pl.pallas_call(
        ranknet_kernel,
        out_shape=jax.ShapeDtypeStruct((1, B), jnp.float32),
        grid_spec=pltpu.PrefetchScalarGridSpec(
            num_scalar_prefetch=0,
            grid=(num_tiles,),
            in_specs=[
                pl.BlockSpec((tb, F), lambda i: (i, 0)),   # x1 tile
                pl.BlockSpec((tb, F), lambda i: (i, 0)),   # x2 tile
                const((H1, F)),                            # w1 (VMEM-resident)
                const((H1, 1)),                            # b1
                const((H2, H1)),                           # w2
                const((H2, 1)),                            # b2
                const((H2, 1)),                            # w3 column
            ],
            out_specs=pl.BlockSpec((1, tb), lambda i: (0, i)),  # lane-dense row
        ),
        compiler_params=pltpu.CompilerParams(
            dimension_semantics=("parallel",)),
    )(x1, x2, w1, b1, w2, b2, w3c)

    return out.reshape(B, 1)


def init_params(key, n_feature, h1_units, h2_units):
    """Deterministic init mimicking nn.Linear (uniform in +-1/sqrt(fan_in)).

    Weights in PyTorch layout (out_features, in_features); biases as
    (out_features, 1) columns.
    """
    ks = jax.random.split(key, 6)

    def linear(kw, kb, fan_in, fan_out):
        bound = 1.0 / jnp.sqrt(fan_in)
        w = jax.random.uniform(kw, (fan_out, fan_in), jnp.float32, -bound, bound)
        b = jax.random.uniform(kb, (fan_out, 1), jnp.float32, -bound, bound)
        return w, b

    w1, b1 = linear(ks[0], ks[1], n_feature, h1_units)
    w2, b2 = linear(ks[2], ks[3], h1_units, h2_units)
    w3, b3 = linear(ks[4], ks[5], h2_units, 1)
    return (w1, b1, w2, b2, w3, b3)


def _reference(x1, x2, params):
    w1, b1, w2, b2, w3, b3 = params

    def mlp(x):
        h1 = jnp.maximum(x @ w1.T + b1.T, 0.0)
        h2 = jnp.maximum(h1 @ w2.T + b2.T, 0.0)
        return h2 @ w3.T + b3.T

    return jax.nn.sigmoid(mlp(x1) - mlp(x2))


if __name__ == "__main__":
    key = jax.random.PRNGKey(0)
    k_x1, k_x2, k_p, k_y1, k_y2 = jax.random.split(key, 5)

    B, n_feature, h1_units, h2_units = 8, 32, 32, 16
    params = init_params(k_p, n_feature, h1_units, h2_units)

    # Small case (single full-array tile).
    x1 = jax.random.normal(k_x1, (B, n_feature), jnp.float32)
    x2 = jax.random.normal(k_x2, (B, n_feature), jnp.float32)
    out = ranknet_forward(x1, x2, params)
    jax.block_until_ready(out)
    ref = _reference(x1, x2, params)
    assert out.shape == (B, 1)
    assert jnp.allclose(out, ref, atol=1e-5, rtol=1e-5)

    # Larger, non-multiple-of-tile case (exercises the batch grid + the ragged
    # last block — no padding pass, no output slice).
    B2 = 300
    y1 = jax.random.normal(k_y1, (B2, n_feature), jnp.float32)
    y2 = jax.random.normal(k_y2, (B2, n_feature), jnp.float32)
    out2 = ranknet_forward(y1, y2, params, tile_b=128)
    jax.block_until_ready(out2)
    ref2 = _reference(y1, y2, params)
    assert out2.shape == (B2, 1)
    assert jnp.allclose(out2, ref2, atol=1e-5, rtol=1e-5)

    print("KERNEL_OK")
</pallas_src>

<mosaic_0001>
module attributes {stable_mosaic.version = 11 : i64} {
  func.func @ranknet_kernel(%arg0: i32, %arg1: memref<8x32xf32, #tpu.memory_space<vmem>>, %arg2: memref<8x32xf32, #tpu.memory_space<vmem>>, %arg3: memref<32x32xf32, #tpu.memory_space<vmem>>, %arg4: memref<32x1xf32, #tpu.memory_space<vmem>>, %arg5: memref<16x32xf32, #tpu.memory_space<vmem>>, %arg6: memref<16x1xf32, #tpu.memory_space<vmem>>, %arg7: memref<16x1xf32, #tpu.memory_space<vmem>>, %arg8: memref<1x8xf32, #tpu.memory_space<vmem>>) attributes {dimension_semantics = [#tpu.dimension_semantics<parallel>], iteration_bounds = array<i64: 1>, scalar_prefetch = 0 : i64, scratch_operands = 0 : i64, tpu.core_type = #tpu.core_type<tc>, window_params = [{transform_indices = @transform_0, window_bounds = array<i64: 8, 32>}, {transform_indices = @transform_1, window_bounds = array<i64: 8, 32>}, {pipeline_mode = #tpu.pipeline_mode<synchronous>, transform_indices = @transform_2, window_bounds = array<i64: 32, 32>}, {pipeline_mode = #tpu.pipeline_mode<synchronous>, transform_indices = @transform_3, window_bounds = array<i64: 32, 1>}, {pipeline_mode = #tpu.pipeline_mode<synchronous>, transform_indices = @transform_4, window_bounds = array<i64: 16, 32>}, {pipeline_mode = #tpu.pipeline_mode<synchronous>, transform_indices = @transform_5, window_bounds = array<i64: 16, 1>}, {pipeline_mode = #tpu.pipeline_mode<synchronous>, transform_indices = @transform_6, window_bounds = array<i64: 16, 1>}, {transform_indices = @transform_7, window_bounds = array<i64: 1, 8>}]} {
    %c0 = arith.constant 0 : index
    %c0_0 = arith.constant 0 : index
    %0 = vector.load %arg1[%c0, %c0_0] : memref<8x32xf32, #tpu.memory_space<vmem>>, vector<8x32xf32>
    %c0_1 = arith.constant 0 : index
    %c0_2 = arith.constant 0 : index
    %1 = vector.load %arg3[%c0_1, %c0_2] : memref<32x32xf32, #tpu.memory_space<vmem>>, vector<32x32xf32>
    %cst = arith.constant dense<0.000000e+00> : vector<32x8xf32>
    %2 = tpu.matmul %1, %0, %cst {dimension_numbers = #tpu.dot_dimension_numbers<[1], [1], [0], [0], [0, 0, 1, 0], [], []>} : vector<32x32xf32>, vector<8x32xf32>, vector<32x8xf32> -> vector<32x8xf32>
    %c0_3 = arith.constant 0 : index
    %c0_4 = arith.constant 0 : index
    %3 = vector.load %arg4[%c0_3, %c0_4] : memref<32x1xf32, #tpu.memory_space<vmem>>, vector<32x1xf32>
    %4 = vector.broadcast %3 : vector<32x1xf32> to vector<32x8xf32>
    %5 = arith.addf %2, %4 : vector<32x8xf32>
    %cst_5 = arith.constant 0.000000e+00 : f32
    %6 = vector.broadcast %cst_5 : f32 to vector<32x8xf32>
    %7 = arith.maximumf %5, %6 : vector<32x8xf32>
    %c0_6 = arith.constant 0 : index
    %c0_7 = arith.constant 0 : index
    %8 = vector.load %arg5[%c0_6, %c0_7] : memref<16x32xf32, #tpu.memory_space<vmem>>, vector<16x32xf32>
    %cst_8 = arith.constant dense<0.000000e+00> : vector<16x8xf32>
    %9 = tpu.matmul %8, %7, %cst_8 {dimension_numbers = #tpu.dot_dimension_numbers<[1], [0], [0], [1], [0, 0, 1, 1], [], []>} : vector<16x32xf32>, vector<32x8xf32>, vector<16x8xf32> -> vector<16x8xf32>
    %c0_9 = arith.constant 0 : index
    %c0_10 = arith.constant 0 : index
    %10 = vector.load %arg6[%c0_9, %c0_10] : memref<16x1xf32, #tpu.memory_space<vmem>>, vector<16x1xf32>
    %11 = vector.broadcast %10 : vector<16x1xf32> to vector<16x8xf32>
    %12 = arith.addf %9, %11 : vector<16x8xf32>
    %cst_11 = arith.constant 0.000000e+00 : f32
    %13 = vector.broadcast %cst_11 : f32 to vector<16x8xf32>
    %14 = arith.maximumf %12, %13 : vector<16x8xf32>
    %c0_12 = arith.constant 0 : index
    %c0_13 = arith.constant 0 : index
    %15 = vector.load %arg2[%c0_12, %c0_13] : memref<8x32xf32, #tpu.memory_space<vmem>>, vector<8x32xf32>
    %c0_14 = arith.constant 0 : index
    %c0_15 = arith.constant 0 : index
    %16 = vector.load %arg3[%c0_14, %c0_15] : memref<32x32xf32, #tpu.memory_space<vmem>>, vector<32x32xf32>
    %cst_16 = arith.constant dense<0.000000e+00> : vector<32x8xf32>
    %17 = tpu.matmul %16, %15, %cst_16 {dimension_numbers = #tpu.dot_dimension_numbers<[1], [1], [0], [0], [0, 0, 1, 0], [], []>} : vector<32x32xf32>, vector<8x32xf32>, vector<32x8xf32> -> vector<32x8xf32>
    %c0_17 = arith.constant 0 : index
    %c0_18 = arith.constant 0 : index
    %18 = vector.load %arg4[%c0_17, %c0_18] : memref<32x1xf32, #tpu.memory_space<vmem>>, vector<32x1xf32>
    %19 = vector.broadcast %18 : vector<32x1xf32> to vector<32x8xf32>
    %20 = arith.addf %17, %19 : vector<32x8xf32>
    %cst_19 = arith.constant 0.000000e+00 : f32
    %21 = vector.broadcast %cst_19 : f32 to vector<32x8xf32>
    %22 = arith.maximumf %20, %21 : vector<32x8xf32>
    %c0_20 = arith.constant 0 : index
    %c0_21 = arith.constant 0 : index
    %23 = vector.load %arg5[%c0_20, %c0_21] : memref<16x32xf32, #tpu.memory_space<vmem>>, vector<16x32xf32>
    %cst_22 = arith.constant dense<0.000000e+00> : vector<16x8xf32>
    %24 = tpu.matmul %23, %22, %cst_22 {dimension_numbers = #tpu.dot_dimension_numbers<[1], [0], [0], [1], [0, 0, 1, 1], [], []>} : vector<16x32xf32>, vector<32x8xf32>, vector<16x8xf32> -> vector<16x8xf32>
    %c0_23 = arith.constant 0 : index
    %c0_24 = arith.constant 0 : index
    %25 = vector.load %arg6[%c0_23, %c0_24] : memref<16x1xf32, #tpu.memory_space<vmem>>, vector<16x1xf32>
    %26 = vector.broadcast %25 : vector<16x1xf32> to vector<16x8xf32>
    %27 = arith.addf %24, %26 : vector<16x8xf32>
    %cst_25 = arith.constant 0.000000e+00 : f32
    %28 = vector.broadcast %cst_25 : f32 to vector<16x8xf32>
    %29 = arith.maximumf %27, %28 : vector<16x8xf32>
    %30 = arith.subf %14, %29 : vector<16x8xf32>
    %c0_26 = arith.constant 0 : index
    %c0_27 = arith.constant 0 : index
    %31 = vector.load %arg7[%c0_26, %c0_27] : memref<16x1xf32, #tpu.memory_space<vmem>>, vector<16x1xf32>
    %32 = vector.broadcast %31 : vector<16x1xf32> to vector<16x8xf32>
    %33 = arith.mulf %30, %32 : vector<16x8xf32>
    %cst_28 = arith.constant dense<0.000000e+00> : vector<8xf32>
    %34 = vector.multi_reduction <add>, %33, %cst_28 [0] : vector<16x8xf32> to vector<8xf32>
    %35 = vector.shape_cast %34 : vector<8xf32> to vector<1x8xf32>
    %36 = math.absf %35 : vector<1x8xf32>
    %cst_29 = arith.constant 0.000000e+00 : f32
    %37 = vector.broadcast %cst_29 : f32 to vector<1x8xf32>
    %38 = arith.subf %37, %36 : vector<1x8xf32>
    %39 = math.exp %38 : vector<1x8xf32>
    %cst_30 = arith.constant 0.000000e+00 : f32
    %40 = vector.broadcast %cst_30 : f32 to vector<1x8xf32>
    %41 = arith.cmpf oge, %35, %40 : vector<1x8xf32>
    %cst_31 = arith.constant 1.000000e+00 : f32
    %42 = vector.broadcast %cst_31 : f32 to vector<1x8xf32>
    %43 = arith.select %41, %42, %39 : vector<1x8xi1>, vector<1x8xf32>
    %cst_32 = arith.constant 1.000000e+00 : f32
    %44 = vector.broadcast %cst_32 : f32 to vector<1x8xf32>
    %45 = arith.addf %44, %39 : vector<1x8xf32>
    %46 = arith.divf %43, %45 : vector<1x8xf32>
    %c0_33 = arith.constant 0 : index
    %c0_34 = arith.constant 0 : index
    %47 = vector.load %arg8[%c0_33, %c0_34] : memref<1x8xf32, #tpu.memory_space<vmem>>, vector<1x8xf32>
    tpu.vector_store %arg8[%c0_33, %c0_34], %46 {strides = array<i32>} : memref<1x8xf32, #tpu.memory_space<vmem>>, vector<1x8xf32>,
    return
  }
  func.func @transform_0(%arg0: i32) -> (i32, i32) {
    %c0_i32 = arith.constant 0 : i32
    %c0_i32_0 = arith.constant 0 : i32
    return %arg0, %c0_i32 : i32, i32
  }
  func.func @transform_1(%arg0: i32) -> (i32, i32) {
    %c0_i32 = arith.constant 0 : i32
    %c0_i32_0 = arith.constant 0 : i32
    return %arg0, %c0_i32 : i32, i32
  }
  func.func @transform_2(%arg0: i32) -> (i32, i32) {
    %c0_i32 = arith.constant 0 : i32
    %c0_i32_0 = arith.constant 0 : i32
    %c0_i32_1 = arith.constant 0 : i32
    return %c0_i32, %c0_i32_0 : i32, i32
  }
  func.func @transform_3(%arg0: i32) -> (i32, i32) {
    %c0_i32 = arith.constant 0 : i32
    %c0_i32_0 = arith.constant 0 : i32
    %c0_i32_1 = arith.constant 0 : i32
    return %c0_i32, %c0_i32_0 : i32, i32
  }
  func.func @transform_4(%arg0: i32) -> (i32, i32) {
    %c0_i32 = arith.constant 0 : i32
    %c0_i32_0 = arith.constant 0 : i32
    %c0_i32_1 = arith.constant 0 : i32
    return %c0_i32, %c0_i32_0 : i32, i32
  }
  func.func @transform_5(%arg0: i32) -> (i32, i32) {
    %c0_i32 = arith.constant 0 : i32
    %c0_i32_0 = arith.constant 0 : i32
    %c0_i32_1 = arith.constant 0 : i32
    return %c0_i32, %c0_i32_0 : i32, i32
  }
  func.func @transform_6(%arg0: i32) -> (i32, i32) {
    %c0_i32 = arith.constant 0 : i32
    %c0_i32_0 = arith.constant 0 : i32
    %c0_i32_1 = arith.constant 0 : i32
    return %c0_i32, %c0_i32_0 : i32, i32
  }
  func.func @transform_7(%arg0: i32) -> (i32, i32) {
    %c0_i32 = arith.constant 0 : i32
    %c0_i32_0 = arith.constant 0 : i32
    return %c0_i32, %arg0 : i32, i32
  }
}

</mosaic_0001>

<bundles_post_ra>
// kernel: tpu_custom_call.1
= control target key start
LH: loop header
LB: loop body
LE: loop exit
PB: predicated region body
PF: predicated region fallthrough
CT: control target
= control target key end

     0   :  { %vm56_vm0 = vcmask 261120   ;;  %v601_v4 = vmov 0   ;;  %s719_s0 = inlined_call_operand.vmem [shape: f32[8,32], index: 0, kind: input, shape index: {}]   ;;  %s720_s1 = inlined_call_operand.vmem [shape: f32[8,32], index: 1, kind: input, shape index: {}]   ;;  %s721_s2 = inlined_call_operand.vmem [shape: f32[32,32], index: 2, kind: input, shape index: {}]   ;;  %s722_s3 = inlined_call_operand.vmem [shape: f32[32,1], index: 3, kind: input, shape index: {}]   ;;  %s723_s4 = inlined_call_operand.vmem [shape: f32[16,32], index: 4, kind: input, shape index: {}]   ;;  %s724_s5 = inlined_call_operand.vmem [shape: f32[16,1], index: 5, kind: input, shape index: {}]   ;;  %s725_s6 = inlined_call_operand.vmem [shape: f32[16,1], index: 6, kind: input, shape index: {}]   ;;  %s726_s7 = inlined_call_operand.hbm [shape: f32[1,8], index: 7, kind: output, shape index: {}]  }
   0x1   :  { %v27_v0 = vld [vmem:[%s719_s0] sm:$0xff]  ;;  %v29_v3 = vld [vmem:[%s721_s2 + $0x8] sm:$0xff]  ;;  %571 = vset.pattern.permute.xlu0 %v601_v4  ;;  %v34_v6 = vld [vmem:[%s722_s3 + $0x10] sm:$0xff]  ;;  %572 = vset.pattern.permute.xlu1 %v601_v4 }
   0x2   :  { %v28_v1 = vld [vmem:[%s721_s2] sm:$0xff]  ;;  %515 = vmatprep.subr.msk.mxu0 %vm56_vm0, %v27_v0  ;;  %v30_v7 = vld [vmem:[%s721_s2 + $0x10] sm:$0xff]  ;;  %v33_v8 = vld [vmem:[%s722_s3 + $0x8] sm:$0xff] }
   0x3   :  { %517 = vmatprep.mubr.msk.f32.mxu0 %vm56_vm0, %v28_v1  ;;  %v258_v2 = vld [vmem:[%s720_s1] sm:$0xff]  ;;  %516 = vmatpush3.xpose.msk.msra.mxu0 %vm56_vm0, %v27_v0 }
   0x4   :  { %v32_v5 = vld [vmem:[%s722_s3] sm:$0xff]  ;;  %534 = vmatprep.subr.msk.mxu0 %vm56_vm0, %v258_v2 }
   0x5   :  { %38 = vperm.xlu0 %571, %v32_v5  }
   0x6   :  { %12 = vsyncpa [#allocation3], 0  ;;  %518 = vmatmul.mubr.msk.f32.vlgmr.msra.gmra.mrb[0].mxu0 %vm56_vm0, %v29_v3  ;;  %48 = vperm.xlu1 %572, %v34_v6   ;;  %v31_v9 = vld [vmem:[%s721_s2 + $0x18] sm:$0xff]  ;;  %v163_v11 = vld [vmem:[%s724_s5] sm:$0xff]  ;;  %vm444_vm1 = vcmask 64512   ;;  %vm463_vm3 = vcmask 57344  }
   0x7   :  { %535 = vmatpush3.xpose.msk.msra.mxu0 %vm56_vm0, %v258_v2  ;;  %520 = vmatprep.mubr.msk.f32.mxu0 %vm56_vm0, %v30_v7  ;;  %v35_v10 = vld [vmem:[%s722_s3 + $0x18] sm:$0xff]  ;;  %v164_v12 = vld [vmem:[%s724_s5 + $0x8] sm:$0xff]  ;;  %v430_v13 = vld [vmem:[%s725_s6] sm:$0xff] }
   0x8   :  { %v431_v14 = vld [vmem:[%s725_s6 + $0x8] sm:$0xff]  ;;  %v161_v15 = vld [vmem:[%s723_s4] sm:$0xff] }
   0x9   :  { %43 = vperm.xlu0 %571, %v33_v8   ;;  %531 = vmatprep.mubr.msk.f32.mxu1 %vm56_vm0, %v161_v15  ;;  %v162_v43 = vld [vmem:[%s723_s4 + $0x8] sm:$0xff]  ;;  %s602_s4 = smov [#allocation2]  }
   0xa   :  { %521 = vmatmul.mubr.msk.f32.gmra.mrb[2].mxu0 %vm56_vm0, %v31_v9  ;;  %53 = vperm.xlu1 %572, %v35_v10   ;;  %s471_s27 = sshll.u32 %s602_s4, 4  ;;  %s472_s27 = int_to_ptr.vmem [resolvable:$true] %s471_s27 }
   0xb   :  { %536 = vmatprep.mubr.msk.f32.mxu0 %vm56_vm0, %v28_v1  ;;  %s577_s28 = scalar_lea.vmem %s472_s27, 16  ;;  %s581_s29 = scalar_lea.vmem %s472_s27, 32 }
   0xc   :  { %p578_p0 = scmp.ne.s32.totalorder %s472_s27, %s577_s28  ;;  %p582_p1 = scmp.lt.s32.totalorder %s472_s27, %s472_s27 }
   0xd   :  { %167 = vperm.xlu0 %571, %v163_v11   ;;  %p583_p2 = scmp.lt.s32.totalorder %s581_s29, %s577_s28 }
   0xe   :  { %537 = vmatmul.mubr.msk.f32.vlgmr.msra.gmra.mrb[4].mxu0 %vm56_vm0, %v29_v3  ;;  %172 = vperm.xlu1 %572, %v164_v12  }
   0xf   :  { %539 = vmatprep.mubr.msk.f32.mxu0 %vm56_vm0, %v30_v7  ;;  %p584_p3 = por %p583_p2, %p582_p1 }
  0x11   :  { %434 = vperm.xlu0 %571, %v430_v13   ;;  %p585_p4 = pnand %p584_p3, %p578_p0 }
  0x12   :  { %540 = vmatmul.mubr.msk.f32.gmra.mrb[6].mxu0 %vm56_vm0, %v31_v9  ;;  %439 = vperm.xlu1 %572, %v431_v14  }
  0x84   :  { %v39_v16 = vpop.permute.xlu0 %38 }
  0x85   :  { %v49_v17 = vpop.permute.xlu1 %48 }
  0x88   :  { %v44_v18 = vpop.permute.xlu0 %43 }
  0x89   :  { %v54_v24 = vpop.permute.xlu1 %53 }
  0x8c   :  { %v168_v52 = vpop.permute.xlu0 %167 }
  0x8d   :  { %v173_v51 = vpop.permute.xlu1 %172 }
  0x90   :  { %v435_v2 = vpop.permute.xlu0 %434 }
  0x91   :  { %v440_v0 = vpop.permute.xlu1 %439 }
  0xd9   :  { %v519_v19 = vpop.f32.mrb[0].mxu0 }
  0xda   :  { %v144_v20 = vadd.f32 %v519_v19, %v44_v18  ;;  %v138_v21 = vpop.f32.mrb[1].mxu0 }
  0xdb   :  { %v139_v22 = vadd.f32 %v138_v21, %v39_v16 }
  0xdc   :  { %v158_v23 = vmax.f32 %v144_v20, 0.0 }
  0xdd   :  { %v157_v25 = vmax.f32 %v139_v22, 0.0  ;;  %v522_v26 = vpop.f32.mrb[2].mxu0 }
  0xde   :  { %v154_v27 = vadd.f32 %v522_v26, %v54_v24  ;;  %v148_v28 = vpop.f32.mrb[3].mxu0 }
  0xdf   :  { %v149_v29 = vadd.f32 %v148_v28, %v49_v17  ;;  %v553_v30 = vpack.c.bf16 %v158_v23, %v157_v25 }
  0xe0   :  { %v160_v31 = vmax.f32 %v154_v27, 0.0 }
  0xe1   :  { %v159_v32 = vmax.f32 %v149_v29, 0.0  ;;  %554 = vmatprep.subr.bf16.mxu1 %v553_v30  ;;  %v538_v33 = vpop.f32.mrb[4].mxu0 }
  0xe2   :  { %v334_v34 = vadd.f32 %v538_v33, %v44_v18  ;;  %556 = vmatpush3.bf16.msra.mxu1 %v553_v30  ;;  %v328_v35 = vpop.f32.mrb[5].mxu0 }
  0xe3   :  { %v557_v36 = vpack.c.bf16 %v160_v31, %v159_v32  ;;  %v329_v37 = vadd.f32 %v328_v35, %v39_v16 }
  0xe4   :  { %v348_v38 = vmax.f32 %v334_v34, 0.0 }
  0xe5   :  { %v347_v39 = vmax.f32 %v329_v37, 0.0  ;;  %558 = vmatprep.subr.bf16.mxu1 %v557_v36  ;;  %v541_v40 = vpop.f32.mrb[6].mxu0 }
  0xe6   :  { %v344_v41 = vadd.f32 %v541_v40, %v54_v24  ;;  %560 = vmatpush3.bf16.msra.mxu1 %v557_v36  ;;  %v338_v42 = vpop.f32.mrb[7].mxu0 }
  0xe7   :  { %v561_v44 = vpack.c.bf16 %v348_v38, %v347_v39  ;;  %v339_v45 = vadd.f32 %v338_v42, %v49_v17 }
  0xe8   :  { %v350_v46 = vmax.f32 %v344_v41, 0.0 }
  0xe9   :  { %v349_v47 = vmax.f32 %v339_v45, 0.0  ;;  %532 = vmatmul.mubr.msk.f32.vlgmr.msra.gmra.mrb[0].mxu1 %vm56_vm0, %v162_v43  ;;  %562 = vmatprep.subr.bf16.mxu1 %v561_v44 }
  0xea   :  { %564 = vmatpush3.bf16.msra.mxu1 %v561_v44  ;;  %550 = vmatprep.mubr.msk.f32.mxu1 %vm56_vm0, %v161_v15 }
  0xeb   :  { %v565_v48 = vpack.c.bf16 %v350_v46, %v349_v47 }
  0xed   :  { %566 = vmatprep.subr.bf16.mxu1 %v565_v48 }
  0xee   :  { %568 = vmatpush3.bf16.msra.mxu1 %v565_v48 }
  0xf1   :  { %551 = vmatmul.mubr.msk.f32.vlgmr.msra.gmra.mrb[2].mxu1 %vm56_vm0, %v162_v43 }
 0x1bc   :  { %v533_v49 = vpop.f32.mrb[0].mxu1 }
 0x1bd   :  { %v247_v50 = vpop.f32.mrb[1].mxu1  ;;  %v253_v53 = vadd.f32 %v533_v49, %v173_v51 }
 0x1be   :  { %v248_v54 = vadd.f32 %v247_v50, %v168_v52 }
 0x1bf   :  { %v257_v59 = vmax.f32 %v253_v53, 0.0 }
 0x1c0   :  { %v256_v61 = vmax.f32 %v248_v54, 0.0 }
 0x1c4   :  { %v552_v55 = vpop.f32.mrb[2].mxu1 }
 0x1c5   :  { %v423_v56 = vadd.f32 %v552_v55, %v173_v51  ;;  %v417_v57 = vpop.f32.mrb[3].mxu1 }
 0x1c6   :  { %v418_v58 = vadd.f32 %v417_v57, %v168_v52 }
 0x1c7   :  { %v427_v60 = vmax.f32 %v423_v56, 0.0 }
 0x1c8   :  { %v426_v62 = vmax.f32 %v418_v58, 0.0 }
 0x1c9   :  { %v429_v63 = vsub.f32 %v257_v59, %v427_v60 }
 0x1ca   :  { %v428_v1 = vsub.f32 %v256_v61, %v426_v62 }
 0x1cb   :  { %v443_v3 = vmul.f32 %v440_v0, %v429_v63 }
 0x1cc   :  { %v442_v4 = vmul.f32 %v435_v2, %v428_v1 }
 0x1cd   :  { %v446_v5 = vsel %vm444_vm1, %v443_v3, 0.0 }
 0x1ce   :  { %v445_v6 = vsel %vm444_vm1, %v442_v4, 0.0 }
 0x1cf   :  { %v447_v7 = vadd.f32 %v446_v5, %v445_v6 }
 0x1d1   :  { %v448_v8 = vrot.slane %v447_v7, 4 }
 0x1d3   :  { %v449_v9 = vadd.f32 %v448_v8, %v447_v7 }
 0x1d5   :  { %v450_v10 = vrot.slane %v449_v9, 2 }
 0x1d7   :  { %v451_v11 = vadd.f32 %v450_v10, %v449_v9 }
 0x1d9   :  { %v452_v12 = vrot.slane %v451_v11, 1 }
 0x1db   :  { %v453_v13 = vadd.f32 %v452_v12, %v451_v11 }
 0x1dd   :  { %v454_v14 = vand.u32 2147483647, %v453_v13  ;;  %vm458_vm2 = vcmp.ge.f32.partialorder %v453_v13, 0.0 }
 0x1df   :  { %v455_v15 = vsub.f32 0.0, %v454_v14 }
 0x1e1   :  { %v456_v16 = vmul.f32 1.442695, %v455_v15 }
 0x1e3   :  { %573 = vpow2.f32 %v456_v16 }
 0x1ed   :  { %v574_v17 = vpop.eup %573 }
 0x1ee   :  { %v460_v18 = vadd.f32 1.0, %v574_v17  ;;  %v459_v20 = vsel %vm458_vm2, 1.0, %v574_v17 }
 0x1f0   :  { %575 = vrcp.f32 %v460_v18 }
 0x1fa   :  { %v576_v19 = vpop.eup %575 }
 0x1fb   :  { %v462_v21 = vmul.f32 %v576_v19, %v459_v20 }
 0x1fd   :  { %464 = vst.msk [vmem:[#allocation2] sm:$0x1] %vm463_vm3, %v462_v21 }
 0x1fe   :  { %588 = shalt.err (!%p585_p4)
}
 0x1ff   :  { %s589_s0 = scalar_lea.hbm %s726_s7, 16 }
 0x200   :  { %p590_p5 = scmp.ne.s32.totalorder %s726_s7, %s589_s0  ;;  %p593_p6 = scmp.lt.u32.totalorder %s589_s0, %s726_s7 }
 0x202   :  { %p595_p7 = pnand %p593_p6, %p590_p5 }
 0x204   :  { %598 = shalt.err (!%p595_p7)
}
 0x205   :  { %474 = dma.vmem_to_hbm [thread:$0]  %s472_s27, 16, %s726_s7, [#allocation3]  }
 0x206   :  { %599 = dma.done.wait [#allocation3], 16  }
 0x207   :  { %600 = vsyncadd [#allocation3], 4294967280 }
 0x208   :  { %478 = vsyncpa [#allocation3], 1 }

</bundles_post_ra>
